<compile_context>
chip_gen: v6e
topology: v6e:2x2x1
jax: 0.10.0
libtpu: 0.0.40
codegen_flags: <defaults>
</compile_context>

<pallas_src>
import jax
import jax.numpy as jnp
from jax.experimental import pallas as pl
from jax.experimental.pallas import tpu as pltpu


def _crop_conv_kernel(x2d_ref, w_ref, adj_ref, gamma_ref, beta_ref, out_ref):
    """One crop-row tile: project -> aggregate (crop only) -> BatchNorm.

    x2d_ref   : (B*C, Fin)     all crop rows of the input, batch collapsed
    w_ref     : (Fin, Fout)
    adj_ref   : (B, TR, C)     this tile's rows of the cropped adjacency
    gamma_ref : (1, TR*Fout)   [lane-dense path]   or (TR, Fout) [fallback path]
    beta_ref  : same shape as gamma_ref
    out_ref   : (B, TR*Fout)   [lane-dense path]   or (B, TR, Fout) [fallback path]
    """
    B, TR, C = adj_ref.shape
    Fout = w_ref.shape[1]

    # (1) support = x_crop @ W: one 2-D MXU matmul (batch collapsed), f32 accumulate.
    support = jnp.dot(x2d_ref[...], w_ref[...], preferred_element_type=jnp.float32)
    support = support.reshape(B, C, Fout).astype(adj_ref.dtype)          # (B, C, Fout)

    # (2) Aggregate over the crop window only.  The 0/1 input_mask is identically 1
    #     inside [start:end, start:end] and 0 elsewhere, so no mask multiply is needed.
    out3 = jnp.einsum("brm,bmf->brf", adj_ref[...], support,
                      preferred_element_type=jnp.float32)                # (B, TR, Fout)

    # (3) BatchNorm1d, training-mode batch statistics (biased variance, eps=1e-5).
    #     All BN math stays in f32 (v5e has no bf16 VPU/EUP).
    # TODO(synk): running_mean / running_var buffer updates (training-time side
    #             effect of nn.BatchNorm1d) are not produced; only the output is.
    if len(out_ref.shape) == 2:
        out_v = out3.reshape(B, TR * Fout)   # lane-dense 2-D slab for BN math + store
    else:
        out_v = out3                         # conservative 3-D fallback
    mean = jnp.mean(out_v, axis=0, keepdims=True)
    var = jnp.mean((out_v - mean) ** 2, axis=0, keepdims=True)
    norm = (out_v - mean) * jax.lax.rsqrt(var + 1e-5)
    out_ref[...] = (norm * gamma_ref[...] + beta_ref[...]).astype(out_ref.dtype)


def _run_crop_kernel(x_crop2d, w_mm, adj_crop, gamma_crop, beta_crop,
                     *, tr, lane_dense, vmem_limit):
    """Launch the Pallas kernel over crop-row tiles; returns a flat (B, C*Fout) slab."""
    B, C, _ = adj_crop.shape
    BC, Fin = x_crop2d.shape
    Fout = w_mm.shape[1]
    grid = (C // tr,)

    if lane_dense:
        g = gamma_crop.reshape(1, C * Fout)
        b = beta_crop.reshape(1, C * Fout)
        out_shape = jax.ShapeDtypeStruct((B, C * Fout), jnp.float32)
        gb_spec = pl.BlockSpec((1, tr * Fout), lambda i: (0, i))
        out_spec = pl.BlockSpec((B, tr * Fout), lambda i: (0, i))
    else:
        g = gamma_crop.reshape(C, Fout)
        b = beta_crop.reshape(C, Fout)
        out_shape = jax.ShapeDtypeStruct((B, C, Fout), jnp.float32)
        gb_spec = pl.BlockSpec((tr, Fout), lambda i: (i, 0))
        out_spec = pl.BlockSpec((B, tr, Fout), lambda i: (0, i, 0))

    out = pl.pallas_call(
        _crop_conv_kernel,
        out_shape=out_shape,
        grid_spec=pltpu.PrefetchScalarGridSpec(
            num_scalar_prefetch=0,
            grid=grid,
            in_specs=[
                pl.BlockSpec((BC, Fin), lambda i: (0, 0)),       # x_crop (all rows, every step)
                pl.BlockSpec((Fin, Fout), lambda i: (0, 0)),     # weight
                pl.BlockSpec((B, tr, C), lambda i: (0, i, 0)),   # adj crop-row tile
                gb_spec,                                         # gamma (crop)
                gb_spec,                                         # beta  (crop)
            ],
            out_specs=out_spec,
        ),
        compiler_params=pltpu.CompilerParams(
            dimension_semantics=("parallel",),   # row tiles are independent (B untiled)
            vmem_limit_bytes=vmem_limit,
        ),
    )(x_crop2d, w_mm, adj_crop, g, b)
    return out if lane_dense else out.reshape(B, C * Fout)


def crop_convolution(x, adj, weight, gamma, beta, start_pos, end_pos, *,
                     matmul_dtype=jnp.float32, row_tile=None):
    """Forward pass of CropConvolution.

    x      : (B, N, Fin)   node features
    adj    : (B, N, N)     adjacency
    weight : (Fin, Fout)
    gamma  : (N*Fout,) or (N, Fout)  BatchNorm1d weight (PyTorch default: ones)
    beta   : (N*Fout,) or (N, Fout)  BatchNorm1d bias   (PyTorch default: zeros)
    start_pos, end_pos : static ints defining input_mask[s:e, s:e] = 1
    matmul_dtype : dtype fed to the MXU (bf16 recommended on v6e/v7x); accumulation
                   and all BatchNorm math stay f32.
    row_tile : crop-row tile size (None -> whole crop).  Must divide (end-start) and
               be a multiple of 8; the batch axis is never tiled so BN stats stay exact.
    """
    B, N, Fin = x.shape
    Fout = weight.shape[1]
    C = end_pos - start_pos
    assert 0 <= start_pos < end_pos <= N, "invalid crop window"
    assert weight.shape[0] == Fin

    gamma_flat = jnp.asarray(gamma, jnp.float32).reshape(N * Fout)
    beta_flat = jnp.asarray(beta, jnp.float32).reshape(N * Fout)

    # Static crop slices: equivalent to `adj * input_mask` (mask is 1 on the window,
    # 0 elsewhere) plus dropping the support rows the zeroed adjacency never touches.
    x_crop2d = x[:, start_pos:end_pos, :].reshape(B * C, Fin).astype(matmul_dtype)
    adj_crop = adj[:, start_pos:end_pos, start_pos:end_pos].astype(matmul_dtype)
    w_mm = weight.astype(matmul_dtype)
    gamma_crop = gamma_flat[start_pos * Fout:end_pos * Fout]
    beta_crop = beta_flat[start_pos * Fout:end_pos * Fout]

    tr = C if row_tile is None else int(row_tile)
    assert C % tr == 0 and (tr == C or tr % 8 == 0), \
        "row_tile must divide the crop size and be a multiple of 8"

    # Explicit VMEM budget: tiny here, but stated so that bigger tiles lift the
    # 16/32 MiB scoped defaults while staying inside v7x's 64 MiB physical VMEM.
    per_step_bytes = 4 * (B * C * Fin + Fin * Fout + B * tr * C
                          + 2 * tr * Fout + B * tr * Fout)
    vmem_limit = int(min(64 * 2 ** 20, max(32 * 2 ** 20, 8 * per_step_bytes)))

    try:
        crop_out = _run_crop_kernel(x_crop2d, w_mm, adj_crop, gamma_crop, beta_crop,
                                    tr=tr, lane_dense=True, vmem_limit=vmem_limit)
        jax.block_until_ready(crop_out)
    except Exception:  # pragma: no cover
        # Conservative fallback: if the installed Mosaic cannot lower the in-kernel
        # (B, TR, Fout) -> (B, TR*Fout) flatten relayout, store 3-D and flatten
        # outside the kernel (only the HBM store width differs; math is identical).
        crop_out = _run_crop_kernel(x_crop2d, w_mm, adj_crop, gamma_crop, beta_crop,
                                    tr=tr, lane_dense=False, vmem_limit=vmem_limit)

    # Rows outside the crop are identically 0 before BatchNorm for every batch
    # element, so their normalized value is exactly `beta`.  Assemble the full
    # lane-flat (B, N*Fout) slab outside the kernel (pure layout plumbing).
    full = jnp.broadcast_to(beta_flat[None, :], (B, N * Fout))
    full = full.at[:, start_pos * Fout:end_pos * Fout].set(crop_out)
    return full.reshape(B, N, Fout)


def reference(x, adj, mask, weight, gamma, beta, matmul_dtype=jnp.float32):
    """Pure-JAX replica of the PyTorch forward (mask multiply, no crop trick)."""
    gamma_flat = jnp.asarray(gamma, jnp.float32).reshape(-1)
    beta_flat = jnp.asarray(beta, jnp.float32).reshape(-1)
    xd = x.astype(matmul_dtype)
    wd = weight.astype(matmul_dtype)
    adjd = (adj * mask[None, :, :]).astype(matmul_dtype)
    support = jnp.einsum("bnf,fo->bno", xd, wd, preferred_element_type=jnp.float32)
    out = jnp.einsum("bnm,bmo->bno", adjd, support.astype(matmul_dtype),
                     preferred_element_type=jnp.float32)
    B, N, F = out.shape
    flat = out.reshape(B, N * F)
    mean = flat.mean(axis=0)
    var = ((flat - mean) ** 2).mean(axis=0)
    norm = (flat - mean) / jnp.sqrt(var + 1e-5)
    return (norm * gamma_flat + beta_flat).reshape(B, N, F)


if __name__ == "__main__":
    # Module hyper-params (synthetic, deterministic).
    B = 4            # batch
    adj_size = 16    # N (number of graph nodes)
    in_features = 8
    out_features = 8
    start_pos, end_pos = 4, 12

    key = jax.random.PRNGKey(0)
    kx, kadj, kw, kg, kb = jax.random.split(key, 5)

    x = jax.random.normal(kx, (B, adj_size, in_features), dtype=jnp.float32)
    adj = jax.random.uniform(kadj, (B, adj_size, adj_size), dtype=jnp.float32)
    weight = jax.random.normal(kw, (in_features, out_features), dtype=jnp.float32) * (
        1.0 / jnp.sqrt(in_features))

    # input_mask (used only by the reference path; the kernel uses the static crop).
    mask = jnp.zeros((adj_size, adj_size), dtype=jnp.float32)
    mask = mask.at[start_pos:end_pos, start_pos:end_pos].set(1.0)

    # BatchNorm1d(out_features * adj_size) affine params.  PyTorch defaults are
    # gamma=1, beta=0; perturbed here so the affine + beta-fill paths are exercised.
    gamma = 1.0 + 0.1 * jax.random.normal(kg, (adj_size * out_features,), jnp.float32)
    beta = 0.1 * jax.random.normal(kb, (adj_size * out_features,), jnp.float32)

    # f32 MXU path.
    out = crop_convolution(x, adj, weight, gamma, beta, start_pos, end_pos)
    jax.block_until_ready(out)
    ref = reference(x, adj, mask, weight, gamma, beta)
    assert out.shape == (B, adj_size, out_features)
    assert jnp.allclose(out, ref, atol=1e-4, rtol=1e-4), "f32 mismatch vs reference"

    # bf16 MXU-input path (recommended on v6e/v7x): bf16 operands, f32 accum + BN.
    out_bf16 = crop_convolution(x, adj, weight, gamma, beta, start_pos, end_pos,
                                matmul_dtype=jnp.bfloat16)
    jax.block_until_ready(out_bf16)
    ref_bf16 = reference(x, adj, mask, weight, gamma, beta, matmul_dtype=jnp.bfloat16)
    assert out_bf16.shape == (B, adj_size, out_features)
    assert jnp.allclose(out_bf16, ref_bf16, atol=5e-3, rtol=5e-3), "bf16 mismatch vs reference"

    print("KERNEL_OK")
</pallas_src>

<mosaic_0001>
module attributes {stable_mosaic.version = 11 : i64} {
  func.func @_crop_conv_kernel(%arg0: i32, %arg1: memref<32x8xf32, #tpu.memory_space<vmem>>, %arg2: memref<8x8xf32, #tpu.memory_space<vmem>>, %arg3: memref<4x8x8xf32, #tpu.memory_space<vmem>>, %arg4: memref<1x64xf32, #tpu.memory_space<vmem>>, %arg5: memref<1x64xf32, #tpu.memory_space<vmem>>, %arg6: memref<4x64xf32, #tpu.memory_space<vmem>>) attributes {dimension_semantics = [#tpu.dimension_semantics<parallel>], iteration_bounds = array<i64: 1>, scalar_prefetch = 0 : i64, scratch_operands = 0 : i64, tpu.core_type = #tpu.core_type<tc>, window_params = [{pipeline_mode = #tpu.pipeline_mode<synchronous>, transform_indices = @transform_0, window_bounds = array<i64: 32, 8>}, {pipeline_mode = #tpu.pipeline_mode<synchronous>, transform_indices = @transform_1, window_bounds = array<i64: 8, 8>}, {transform_indices = @transform_2, window_bounds = array<i64: 4, 8, 8>}, {transform_indices = @transform_3, window_bounds = array<i64: 1, 64>}, {transform_indices = @transform_4, window_bounds = array<i64: 1, 64>}, {transform_indices = @transform_5, window_bounds = array<i64: 4, 64>}]} {
    %c0 = arith.constant 0 : index
    %c0_0 = arith.constant 0 : index
    %0 = vector.load %arg1[%c0, %c0_0] : memref<32x8xf32, #tpu.memory_space<vmem>>, vector<32x8xf32>
    %c0_1 = arith.constant 0 : index
    %c0_2 = arith.constant 0 : index
    %1 = vector.load %arg2[%c0_1, %c0_2] : memref<8x8xf32, #tpu.memory_space<vmem>>, vector<8x8xf32>
    %cst = arith.constant dense<0.000000e+00> : vector<32x8xf32>
    %2 = tpu.matmul %0, %1, %cst {dimension_numbers = #tpu.dot_dimension_numbers<[1], [0], [0], [1], [0, 0, 1, 1], [], []>} : vector<32x8xf32>, vector<8x8xf32>, vector<32x8xf32> -> vector<32x8xf32>
    %3 = vector.shape_cast %2 : vector<32x8xf32> to vector<4x8x8xf32>
    %c0_3 = arith.constant 0 : index
    %c0_4 = arith.constant 0 : index
    %c0_5 = arith.constant 0 : index
    %4 = vector.load %arg3[%c0_3, %c0_4, %c0_5] : memref<4x8x8xf32, #tpu.memory_space<vmem>>, vector<4x8x8xf32>
    "tpu.trace_start"() <{level = 10 : i32, message = "brm,bmf->brf"}> : () -> ()
    %cst_6 = arith.constant dense<0.000000e+00> : vector<4x8x8xf32>
    %5 = tpu.matmul %4, %3, %cst_6 {dimension_numbers = #tpu.dot_dimension_numbers<[2], [1], [1], [2], [0, 0, 0, 1, 1, 2], [0], [0]>} : vector<4x8x8xf32>, vector<4x8x8xf32>, vector<4x8x8xf32> -> vector<4x8x8xf32>
    "tpu.trace_stop"() : () -> ()
    %6 = vector.shape_cast %5 : vector<4x8x8xf32> to vector<4x64xf32>
    %cst_7 = arith.constant dense<0.000000e+00> : vector<64xf32>
    %7 = vector.multi_reduction <add>, %6, %cst_7 [0] : vector<4x64xf32> to vector<64xf32>
    %8 = vector.shape_cast %7 : vector<64xf32> to vector<1x64xf32>
    %cst_8 = arith.constant 4.000000e+00 : f32
    %9 = vector.broadcast %cst_8 : f32 to vector<1x64xf32>
    %10 = arith.divf %8, %9 : vector<1x64xf32>
    %11 = vector.broadcast %10 : vector<1x64xf32> to vector<4x64xf32>
    %12 = arith.subf %6, %11 : vector<4x64xf32>
    %13 = arith.mulf %12, %12 : vector<4x64xf32>
    %cst_9 = arith.constant dense<0.000000e+00> : vector<64xf32>
    %14 = vector.multi_reduction <add>, %13, %cst_9 [0] : vector<4x64xf32> to vector<64xf32>
    %15 = vector.shape_cast %14 : vector<64xf32> to vector<1x64xf32>
    %cst_10 = arith.constant 4.000000e+00 : f32
    %16 = vector.broadcast %cst_10 : f32 to vector<1x64xf32>
    %17 = arith.divf %15, %16 : vector<1x64xf32>
    %18 = vector.broadcast %10 : vector<1x64xf32> to vector<4x64xf32>
    %19 = arith.subf %6, %18 : vector<4x64xf32>
    %cst_11 = arith.constant 9.99999974E-6 : f32
    %20 = vector.broadcast %cst_11 : f32 to vector<1x64xf32>
    %21 = arith.addf %17, %20 : vector<1x64xf32>
    %22 = math.rsqrt %21 : vector<1x64xf32>
    %23 = vector.broadcast %22 : vector<1x64xf32> to vector<4x64xf32>
    %24 = arith.mulf %19, %23 : vector<4x64xf32>
    %c0_12 = arith.constant 0 : index
    %c0_13 = arith.constant 0 : index
    %25 = vector.load %arg4[%c0_12, %c0_13] : memref<1x64xf32, #tpu.memory_space<vmem>>, vector<1x64xf32>
    %26 = vector.broadcast %25 : vector<1x64xf32> to vector<4x64xf32>
    %27 = arith.mulf %24, %26 : vector<4x64xf32>
    %c0_14 = arith.constant 0 : index
    %c0_15 = arith.constant 0 : index
    %28 = vector.load %arg5[%c0_14, %c0_15] : memref<1x64xf32, #tpu.memory_space<vmem>>, vector<1x64xf32>
    %29 = vector.broadcast %28 : vector<1x64xf32> to vector<4x64xf32>
    %30 = arith.addf %27, %29 : vector<4x64xf32>
    %c0_16 = arith.constant 0 : index
    %c0_17 = arith.constant 0 : index
    %31 = vector.load %arg6[%c0_16, %c0_17] : memref<4x64xf32, #tpu.memory_space<vmem>>, vector<4x64xf32>
    tpu.vector_store %arg6[%c0_16, %c0_17], %30 {strides = array<i32>} : memref<4x64xf32, #tpu.memory_space<vmem>>, vector<4x64xf32>,
    return
  }
  func.func @transform_0(%arg0: i32) -> (i32, i32) {
    %c0_i32 = arith.constant 0 : i32
    %c0_i32_0 = arith.constant 0 : i32
    %c0_i32_1 = arith.constant 0 : i32
    return %c0_i32, %c0_i32_0 : i32, i32
  }
  func.func @transform_1(%arg0: i32) -> (i32, i32) {
    %c0_i32 = arith.constant 0 : i32
    %c0_i32_0 = arith.constant 0 : i32
    %c0_i32_1 = arith.constant 0 : i32
    return %c0_i32, %c0_i32_0 : i32, i32
  }
  func.func @transform_2(%arg0: i32) -> (i32, i32, i32) {
    %c0_i32 = arith.constant 0 : i32
    %c0_i32_0 = arith.constant 0 : i32
    %c0_i32_1 = arith.constant 0 : i32
    return %c0_i32, %arg0, %c0_i32_0 : i32, i32, i32
  }
  func.func @transform_3(%arg0: i32) -> (i32, i32) {
    %c0_i32 = arith.constant 0 : i32
    %c0_i32_0 = arith.constant 0 : i32
    return %c0_i32, %arg0 : i32, i32
  }
  func.func @transform_4(%arg0: i32) -> (i32, i32) {
    %c0_i32 = arith.constant 0 : i32
    %c0_i32_0 = arith.constant 0 : i32
    return %c0_i32, %arg0 : i32, i32
  }
  func.func @transform_5(%arg0: i32) -> (i32, i32) {
    %c0_i32 = arith.constant 0 : i32
    %c0_i32_0 = arith.constant 0 : i32
    return %c0_i32, %arg0 : i32, i32
  }
}

module attributes {stable_mosaic.version = 11 : i64} {
  func.func @_crop_conv_kernel(%arg0: i32, %arg1: memref<32x8xf32, #tpu.memory_space<vmem>>, %arg2: memref<8x8xf32, #tpu.memory_space<vmem>>, %arg3: memref<4x8x8xf32, #tpu.memory_space<vmem>>, %arg4: memref<8x8xf32, #tpu.memory_space<vmem>>, %arg5: memref<8x8xf32, #tpu.memory_space<vmem>>, %arg6: memref<4x8x8xf32, #tpu.memory_space<vmem>>) attributes {dimension_semantics = [#tpu.dimension_semantics<parallel>], iteration_bounds = array<i64: 1>, scalar_prefetch = 0 : i64, scratch_operands = 0 : i64, tpu.core_type = #tpu.core_type<tc>, window_params = [{pipeline_mode = #tpu.pipeline_mode<synchronous>, transform_indices = @transform_0, window_bounds = array<i64: 32, 8>}, {pipeline_mode = #tpu.pipeline_mode<synchronous>, transform_indices = @transform_1, window_bounds = array<i64: 8, 8>}, {transform_indices = @transform_2, window_bounds = array<i64: 4, 8, 8>}, {transform_indices = @transform_3, window_bounds = array<i64: 8, 8>}, {transform_indices = @transform_4, window_bounds = array<i64: 8, 8>}, {transform_indices = @transform_5, window_bounds = array<i64: 4, 8, 8>}]} {
    %c0 = arith.constant 0 : index
    %c0_0 = arith.constant 0 : index
    %0 = vector.load %arg1[%c0, %c0_0] : memref<32x8xf32, #tpu.memory_space<vmem>>, vector<32x8xf32>
    %c0_1 = arith.constant 0 : index
    %c0_2 = arith.constant 0 : index
    %1 = vector.load %arg2[%c0_1, %c0_2] : memref<8x8xf32, #tpu.memory_space<vmem>>, vector<8x8xf32>
    %cst = arith.constant dense<0.000000e+00> : vector<32x8xf32>
    %2 = tpu.matmul %0, %1, %cst {dimension_numbers = #tpu.dot_dimension_numbers<[1], [0], [0], [1], [0, 0, 1, 1], [], []>} : vector<32x8xf32>, vector<8x8xf32>, vector<32x8xf32> -> vector<32x8xf32>
    %3 = vector.shape_cast %2 : vector<32x8xf32> to vector<4x8x8xf32>
    %c0_3 = arith.constant 0 : index
    %c0_4 = arith.constant 0 : index
    %c0_5 = arith.constant 0 : index
    %4 = vector.load %arg3[%c0_3, %c0_4, %c0_5] : memref<4x8x8xf32, #tpu.memory_space<vmem>>, vector<4x8x8xf32>
    "tpu.trace_start"() <{level = 10 : i32, message = "brm,bmf->brf"}> : () -> ()
    %cst_6 = arith.constant dense<0.000000e+00> : vector<4x8x8xf32>
    %5 = tpu.matmul %4, %3, %cst_6 {dimension_numbers = #tpu.dot_dimension_numbers<[2], [1], [1], [2], [0, 0, 0, 1, 1, 2], [0], [0]>} : vector<4x8x8xf32>, vector<4x8x8xf32>, vector<4x8x8xf32> -> vector<4x8x8xf32>
    "tpu.trace_stop"() : () -> ()
    %cst_7 = arith.constant dense<0.000000e+00> : vector<8x8xf32>
    %6 = vector.multi_reduction <add>, %5, %cst_7 [0] : vector<4x8x8xf32> to vector<8x8xf32>
    %7 = vector.shape_cast %6 : vector<8x8xf32> to vector<1x8x8xf32>
    %cst_8 = arith.constant 4.000000e+00 : f32
    %8 = vector.broadcast %cst_8 : f32 to vector<1x8x8xf32>
    %9 = arith.divf %7, %8 : vector<1x8x8xf32>
    %10 = vector.broadcast %9 : vector<1x8x8xf32> to vector<4x8x8xf32>
    %11 = arith.subf %5, %10 : vector<4x8x8xf32>
    %12 = arith.mulf %11, %11 : vector<4x8x8xf32>
    %cst_9 = arith.constant dense<0.000000e+00> : vector<8x8xf32>
    %13 = vector.multi_reduction <add>, %12, %cst_9 [0] : vector<4x8x8xf32> to vector<8x8xf32>
    %14 = vector.shape_cast %13 : vector<8x8xf32> to vector<1x8x8xf32>
    %cst_10 = arith.constant 4.000000e+00 : f32
    %15 = vector.broadcast %cst_10 : f32 to vector<1x8x8xf32>
    %16 = arith.divf %14, %15 : vector<1x8x8xf32>
    %17 = vector.broadcast %9 : vector<1x8x8xf32> to vector<4x8x8xf32>
    %18 = arith.subf %5, %17 : vector<4x8x8xf32>
    %cst_11 = arith.constant 9.99999974E-6 : f32
    %19 = vector.broadcast %cst_11 : f32 to vector<1x8x8xf32>
    %20 = arith.addf %16, %19 : vector<1x8x8xf32>
    %21 = math.rsqrt %20 : vector<1x8x8xf32>
    %22 = vector.broadcast %21 : vector<1x8x8xf32> to vector<4x8x8xf32>
    %23 = arith.mulf %18, %22 : vector<4x8x8xf32>
    %c0_12 = arith.constant 0 : index
    %c0_13 = arith.constant 0 : index
    %24 = vector.load %arg4[%c0_12, %c0_13] : memref<8x8xf32, #tpu.memory_space<vmem>>, vector<8x8xf32>
    %25 = vector.shape_cast %24 : vector<8x8xf32> to vector<1x8x8xf32>
    %26 = vector.broadcast %25 : vector<1x8x8xf32> to vector<4x8x8xf32>
    %27 = arith.mulf %23, %26 : vector<4x8x8xf32>
    %c0_14 = arith.constant 0 : index
    %c0_15 = arith.constant 0 : index
    %28 = vector.load %arg5[%c0_14, %c0_15] : memref<8x8xf32, #tpu.memory_space<vmem>>, vector<8x8xf32>
    %29 = vector.shape_cast %28 : vector<8x8xf32> to vector<1x8x8xf32>
    %30 = vector.broadcast %29 : vector<1x8x8xf32> to vector<4x8x8xf32>
    %31 = arith.addf %27, %30 : vector<4x8x8xf32>
    %c0_16 = arith.constant 0 : index
    %c0_17 = arith.constant 0 : index
    %c0_18 = arith.constant 0 : index
    %32 = vector.load %arg6[%c0_16, %c0_17, %c0_18] : memref<4x8x8xf32, #tpu.memory_space<vmem>>, vector<4x8x8xf32>
    tpu.vector_store %arg6[%c0_16, %c0_17, %c0_18], %31 {strides = array<i32>} : memref<4x8x8xf32, #tpu.memory_space<vmem>>, vector<4x8x8xf32>,
    return
  }
  func.func @transform_0(%arg0: i32) -> (i32, i32) {
    %c0_i32 = arith.constant 0 : i32
    %c0_i32_0 = arith.constant 0 : i32
    %c0_i32_1 = arith.constant 0 : i32
    return %c0_i32, %c0_i32_0 : i32, i32
  }
  func.func @transform_1(%arg0: i32) -> (i32, i32) {
    %c0_i32 = arith.constant 0 : i32
    %c0_i32_0 = arith.constant 0 : i32
    %c0_i32_1 = arith.constant 0 : i32
    return %c0_i32, %c0_i32_0 : i32, i32
  }
  func.func @transform_2(%arg0: i32) -> (i32, i32, i32) {
    %c0_i32 = arith.constant 0 : i32
    %c0_i32_0 = arith.constant 0 : i32
    %c0_i32_1 = arith.constant 0 : i32
    return %c0_i32, %arg0, %c0_i32_0 : i32, i32, i32
  }
  func.func @transform_3(%arg0: i32) -> (i32, i32) {
    %c0_i32 = arith.constant 0 : i32
    %c0_i32_0 = arith.constant 0 : i32
    return %arg0, %c0_i32 : i32, i32
  }
  func.func @transform_4(%arg0: i32) -> (i32, i32) {
    %c0_i32 = arith.constant 0 : i32
    %c0_i32_0 = arith.constant 0 : i32
    return %arg0, %c0_i32 : i32, i32
  }
  func.func @transform_5(%arg0: i32) -> (i32, i32, i32) {
    %c0_i32 = arith.constant 0 : i32
    %c0_i32_0 = arith.constant 0 : i32
    %c0_i32_1 = arith.constant 0 : i32
    return %c0_i32, %arg0, %c0_i32_0 : i32, i32, i32
  }
}

</mosaic_0001>

<bundles_post_ra>
// kernel: tpu_custom_call.1
= control target key start
LH: loop header
LB: loop body
LE: loop exit
PB: predicated region body
PF: predicated region fallthrough
CT: control target
= control target key end

     0   :  { %vm26_vm0 = vcmask 64512   ;;  %s776_s0 = inlined_call_operand.vmem [shape: f32[32,8], index: 0, kind: input, shape index: {}]   ;;  %s777_s1 = inlined_call_operand.vmem [shape: f32[8,8], index: 1, kind: input, shape index: {}]   ;;  %s778_s2 = inlined_call_operand.vmem [shape: f32[4,8,8], index: 2, kind: input, shape index: {}]   ;;  %s779_s3 = inlined_call_operand.vmem [shape: f32[1,64], index: 3, kind: input, shape index: {}]   ;;  %s780_s4 = inlined_call_operand.vmem [shape: f32[1,64], index: 4, kind: input, shape index: {}]   ;;  %s781_s5 = inlined_call_operand.hbm [shape: f32[4,64], index: 5, kind: output, shape index: {}]  }
   0x1   :  { %v25_v0 = vld [vmem:[%s777_s1] sm:$0xff]  ;;  %v22_v2 = vld [vmem:[%s776_s0 + $0x8] sm:$0xff]  ;;  %v23_v3 = vld [vmem:[%s776_s0 + $0x10] sm:$0xff] }
   0x2   :  { %v21_v1 = vld [vmem:[%s776_s0] sm:$0xff]  ;;  %606 = vmatprep.subr.mxu0 %v25_v0 }
   0x3   :  { %608 = vmatprep.mubr.msk.f32.mxu0 %vm26_vm0, %v21_v1 }
   0x4   :  { %10 = vsyncpa [#allocation3], 0  ;;  %607 = vmatpush3.msra.mxu0 %v25_v0  ;;  %v24_v4 = vld [vmem:[%s776_s0 + $0x18] sm:$0xff]  ;;  %v670_v5 = vmov 0.0   ;;  %vm671_vm1 = vmmov 0   ;;  %v124_v7 = vld [vmem:[%s778_s2] sm:$0xff]  ;;  %v425_v16 = vlaneseq }
   0x5   :  { %609 = vmatmul.mubr.msk.f32.vlgmr.msra.gmra.mxu0 %vm26_vm0, %v22_v2  ;;  %614 = vmatprep.subr.mxu1 %v670_v5  ;;  %v125_v10 = vld [vmem:[%s778_s2 + $0x8] sm:$0xff]  ;;  %v126_v11 = vld [vmem:[%s778_s2 + $0x10] sm:$0xff]  ;;  %v127_v13 = vld [vmem:[%s778_s2 + $0x18] sm:$0xff]  ;;  %v672_v14 = vmov 1983009808   ;;  %s674_s2 = smov 32  }
   0x6   :  { %611 = vmatprep.mubr.msk.f32.mxu0 %vm26_vm0, %v23_v3  ;;  %624 = vmatprep.subr.mxu0 %v670_v5  ;;  %v423_v15 = vunpack.c.l.s4 %v672_v14  ;;  %v673_v19 = vmov 1934713408   ;;  %v426_v22 = vshrl.u32 %v425_v16, 7  ;;  %s675_s9 = smov 16   ;;  %s676_s10 = smov 24   ;;  %vm517_vm2 = vcmask 130048  }
   0x7   :  { %616 = vmatprep.mubr.msk.f32.mxu1 %vm671_vm1, %v670_v5  ;;  %v455_v20 = vunpack.c.l.s4 %v673_v19  ;;  %s677_s11 = smov 8   ;;  %s678_s12 = smov 48   ;;  %vm519_vm3 = vcmask 195584   ;;  %vm521_vm4 = vcmask 261120   ;;  %vm523_vm5 = vcmask 326656  }
   0x8   :  { %v424_v21 = vunpack.c.0.s8 %v423_v15  ;;  %s679_s13 = smov 40   ;;  %s680_s14 = smov 56   ;;  %vm525_vm6 = vcmask 392192   ;;  %vm527_vm7 = vcmask 457728   ;;  %vm529_vm8 = vcmask 519168  }
   0x9   :  { %612 = vmatmul.mubr.msk.f32.gmra.mxu0 %vm26_vm0, %v24_v4  ;;  %v456_v27 = vunpack.c.0.s8 %v455_v20  ;;  %s681_s19 = smov [#allocation2]  }
   0xa   :  { %626 = vmatprep.mubr.msk.f32.mxu0 %vm671_vm1, %v670_v5  ;;  %v427_v30 = vsub.s32 %v424_v21, %v426_v22  ;;  %s575_s20 = sshll.u32 %s681_s19, 4  ;;  %s576_s20 = int_to_ptr.vmem [resolvable:$true] %s575_s20 }
   0xb   :  { %v459_v35 = vsub.s32 %v456_v27, %v426_v22  ;;  %v591_v22 = vld [vmem:[%s779_s3] ss:$0 sm:$0xff]  ;;  %s648_s21 = scalar_lea.vmem %s576_s20, 64  ;;  %p653_p1 = scmp.lt.s32.totalorder %s576_s20, %s576_s20 }
   0xc   :  { %p649_p0 = scmp.ne.s32.totalorder %s576_s20, %s648_s21  ;;  %p654_p2 = scmp.lt.s32.totalorder %s648_s21, %s648_s21 }
   0xe   :  { %p655_p3 = por %p654_p2, %p653_p1 }
  0x10   :  { %p656_p4 = pnand %p655_p3, %p649_p0 }
  0xc5   :  { %v610_v6 = vpop.f32.mrf.mxu0 }
  0xc7   :  { %v105_v8 = vpop.f32.mrf.mxu0 }
  0xc8   :  { %615 = vmatpush3.msra.mxu1 %v105_v8 }
  0xc9   :  { %v613_v9 = vpop.f32.mrf.mxu0  ;;  %617 = vmatmul.mubr.msk.f32.vlgmr.msra.gmra.mxu1 %vm26_vm0, %v124_v7  ;;  %619 = vmatprep.subr.mxu1 %v670_v5 }
  0xca   :  { %620 = vmatpush3.msra.mxu1 %v610_v6  ;;  %621 = vmatprep.mubr.msk.f32.mxu1 %vm671_vm1, %v670_v5 }
  0xcb   :  { %v115_v12 = vpop.f32.mrf.mxu0  ;;  %629 = vmatprep.subr.mxu1 %v670_v5 }
  0xcc   :  { %625 = vmatpush3.msra.mxu0 %v115_v12 }
  0xcd   :  { %622 = vmatmul.mubr.msk.f32.vlgmr.msra.gmra.mxu1 %vm26_vm0, %v125_v10  ;;  %627 = vmatmul.mubr.msk.f32.vlgmr.msra.gmra.mxu0 %vm26_vm0, %v126_v11 }
  0xce   :  { %630 = vmatpush3.msra.mxu1 %v613_v9  ;;  %631 = vmatprep.mubr.msk.f32.mxu1 %vm671_vm1, %v670_v5 }
  0xd1   :  { %632 = vmatmul.mubr.msk.f32.vlgmr.msra.gmra.mxu1 %vm26_vm0, %v127_v13 }
 0x189   :  { %v197_v17 = vpop.f32.mrf.mxu1 }
 0x18b   :  { %v618_v18 = vpop.f32.mrf.mxu1 }
 0x18d   :  { %v270_v23 = vpop.f32.mrf.mxu1  ;;  %v343_v24 = vpop.f32.mrf.mxu0 }
 0x18e   :  { %v420_v28 = vcombine.low %v197_v17, %v343_v24  ;;  %v421_v29 = vcombine.high %v197_v17, %v343_v24  ;;  %v592_v24 = vld [vmem:[%s780_s4] ss:$0 sm:$0xff] }
 0x18f   :  { %v623_v25 = vpop.f32.mrf.mxu1  ;;  %v628_v26 = vpop.f32.mrf.mxu0 }
 0x190   :  { %v428_v36 = vrot.slane %v420_v28, %v427_v30  ;;  %v435_v37 = vrot.slane %v421_v29, %v427_v30 }
 0x191   :  { %v416_v31 = vpop.f32.mrf.mxu1 }
 0x192   :  { %v436_v32 = vcombine.low %v270_v23, %v416_v31  ;;  %v437_v33 = vcombine.high %v270_v23, %v416_v31 }
 0x193   :  { %v633_v34 = vpop.f32.mrf.mxu1 }
 0x194   :  { %v444_v38 = vrot.slane %v436_v32, %v427_v30  ;;  %v451_v39 = vrot.slane %v437_v33, %v427_v30 }
 0x196   :  { %v452_v40 = vcombine.low %v428_v36, %v444_v38  ;;  %v468_v41 = vcombine.low %v435_v37, %v451_v39  ;;  %v453_v42 = vcombine.high %v428_v36, %v444_v38  ;;  %v469_v46 = vcombine.high %v435_v37, %v451_v39 }
 0x198   :  { %v476_v43 = vrot.slane %v468_v41, %v459_v35  ;;  %v467_v44 = vrot.slane %v453_v42, %v459_v35  ;;  %v460_v45 = vrot.slane %v452_v40, %v459_v35  ;;  %v483_v50 = vrot.slane %v469_v46, %v459_v35 }
 0x19a   :  { %501 = vrot.lane.b32.xlu1 %v476_v43, %s674_s2  ;;  %493 = vrot.lane.b32.xlu0 %v467_v44, %s675_s9  ;;  %v485_v47 = vcombine.high %v467_v44, %v670_v5  ;;  %v484_v48 = vcombine.high %v460_v45, %v670_v5  ;;  %v486_v49 = vcombine.high %v476_v43, %v670_v5 }
 0x19b   :  { %v487_v51 = vcombine.high %v483_v50, %v670_v5 }
 0x19e   :  { %497 = vrot.lane.b32.xlu1 %v485_v47, %s676_s10  ;;  %489 = vrot.lane.b32.xlu0 %v484_v48, %s677_s11 }
 0x1a2   :  { %509 = vrot.lane.b32.xlu1 %v483_v50, %s678_s12  ;;  %505 = vrot.lane.b32.xlu0 %v486_v49, %s679_s13 }
 0x1a6   :  { %513 = vrot.lane.b32.xlu0 %v487_v51, %s680_s14 }
 0x20c   :  { %v502_v52 = vpop.permute.xlu1 %501  ;;  %v494_v53 = vpop.permute.xlu0 %493 }
 0x210   :  { %v498_v54 = vpop.permute.xlu1 %497  ;;  %v490_v55 = vpop.permute.xlu0 %489 }
 0x211   :  { %v516_v56 = vsel %vm26_vm0, %v460_v45, %v490_v55 }
 0x212   :  { %v518_v57 = vsel %vm517_vm2, %v516_v56, %v494_v53 }
 0x213   :  { %v520_v58 = vsel %vm519_vm3, %v518_v57, %v498_v54 }
 0x214   :  { %v522_v59 = vsel %vm521_vm4, %v520_v58, %v502_v52  ;;  %v506_v60 = vpop.permute.xlu0 %505  ;;  %v510_v61 = vpop.permute.xlu1 %509 }
 0x215   :  { %v524_v62 = vsel %vm523_vm5, %v522_v59, %v506_v60 }
 0x216   :  { %v526_v63 = vsel %vm525_vm6, %v524_v62, %v510_v61 }
 0x218   :  { %v514_v0 = vpop.permute.xlu0 %513 }
 0x219   :  { %v528_v1 = vsel %vm527_vm7, %v526_v63, %v514_v0 }
 0x21a   :  { %v530_v2 = vsel %vm529_vm8, %v528_v1, 0.0 }
 0x21b   :  { %v531_v3 = vrot.slane %v530_v2, 4 }
 0x21d   :  { %v532_v4 = vadd.f32 %v531_v3, %v530_v2 }
 0x21f   :  { %v533_v5 = vrot.slane %v532_v4, 2 }
 0x221   :  { %v534_v6 = vadd.f32 %v533_v5, %v532_v4 }
 0x223   :  { %v535_v7 = vrot.slane %v534_v6, 1 }
 0x225   :  { %v536_v8 = vadd.f32 %v535_v7, %v534_v6 }
 0x227   :  { %v538_v9 = vmul.f32 0.25, %v536_v8 }
 0x229   :  { %v539_v10 = vsub.f32 %v528_v1, %v538_v9 }
 0x22b   :  { %v540_v11 = vmul.f32 %v539_v10, %v539_v10 }
 0x22d   :  { %v541_v12 = vsel %vm529_vm8, %v540_v11, 0.0 }
 0x22e   :  { %v542_v13 = vrot.slane %v541_v12, 4 }
 0x230   :  { %v543_v14 = vadd.f32 %v542_v13, %v541_v12 }
 0x232   :  { %v544_v15 = vrot.slane %v543_v14, 2 }
 0x234   :  { %v545_v16 = vadd.f32 %v544_v15, %v543_v14 }
 0x236   :  { %v546_v17 = vrot.slane %v545_v16, 1 }
 0x238   :  { %v547_v18 = vadd.f32 %v546_v17, %v545_v16 }
 0x23a   :  { %v548_v19 = vmul.f32 0.25, %v547_v18 }
 0x23c   :  { %v549_v20 = vadd.f32 1e-05, %v548_v19 }
 0x23e   :  { %646 = vrsqrt.f32 %v549_v20 }
 0x24b   :  { %v647_v21 = vpop.eup %646 }
 0x24c   :  { %v551_v23 = vmul.f32 %v647_v21, %v539_v10 }
 0x24e   :  { %v559_v25 = vmul.f32 %v591_v22, %v551_v23 }
 0x250   :  { %v567_v26 = vadd.f32 %v592_v24, %v559_v25 }
 0x252   :  { %568 = vst.msk [vmem:[#allocation2] sm:$0xf] %vm529_vm8, %v567_v26 }
 0x253   :  { %659 = shalt.err (!%p656_p4)
}
 0x254   :  { %578 = dma.vmem_to_hbm [thread:$0]  %s576_s20, 64, %s781_s5, [#allocation3]  }
 0x255   :  { %668 = dma.done.wait [#allocation3], 64  }
 0x256   :  { %669 = vsyncadd [#allocation3], 4294967232 }
 0x257   :  { %582 = vsyncpa [#allocation3], 1 }

// kernel: tpu_custom_call.1
= control target key start
LH: loop header
LB: loop body
LE: loop exit
PB: predicated region body
PF: predicated region fallthrough
CT: control target
= control target key end

     0   :  { %10 = vsyncpa [#allocation3], 0  ;;  %s728_s0 = inlined_call_operand.vmem [shape: f32[32,8], index: 0, kind: input, shape index: {}]   ;;  %s729_s1 = inlined_call_operand.vmem [shape: f32[8,8], index: 1, kind: input, shape index: {}]   ;;  %s730_s2 = inlined_call_operand.vmem [shape: f32[4,8,8], index: 2, kind: input, shape index: {}]   ;;  %s731_s3 = inlined_call_operand.hbm [shape: f32[8,8], index: 3, kind: input, shape index: {}]   ;;  %s732_s4 = inlined_call_operand.hbm [shape: f32[8,8], index: 4, kind: input, shape index: {}]   ;;  %s733_s5 = inlined_call_operand.hbm [shape: f32[4,8,8], index: 5, kind: output, shape index: {}]  }
   0x1   :  { %11 = vsyncpa [#allocation6], 0 }
   0x2   :  { %12 = vsyncpa [#allocation4], 0  ;;  %s631_s18 = smov [#allocation2]   ;;  %s632_s20 = smov [#allocation5]  }
   0x3   :  { %s25_s19 = sshll.u32 %s631_s18, 4  ;;  %s35_s21 = sshll.u32 %s632_s20, 4  ;;  %s26_s19 = int_to_ptr.vmem [resolvable:$true] %s25_s19  ;;  %s36_s21 = int_to_ptr.vmem [resolvable:$true] %s35_s21 }
   0x4   :  { %s573_s22 = scalar_lea.vmem %s26_s19, 128  ;;  %p578_p1 = scmp.lt.s32.totalorder %s26_s19, %s26_s19 }
   0x5   :  { %p574_p0 = scmp.ne.s32.totalorder %s26_s19, %s573_s22  ;;  %p579_p2 = scmp.lt.s32.totalorder %s573_s22, %s573_s22 }
   0x7   :  { %p580_p3 = por %p579_p2, %p578_p1 }
   0x9   :  { %p581_p4 = pnand %p580_p3, %p574_p0 }
   0xb   :  { %584 = shalt.err (!%p581_p4)
}
   0xc   :  { %28 = dma.hbm_to_vmem [thread:$0]  %s731_s3, 128, %s26_s19, [#allocation3]  }
   0xd   :  { %s593_s25 = scalar_lea.vmem %s36_s21, 128  ;;  %p598_p6 = scmp.lt.s32.totalorder %s36_s21, %s36_s21 }
   0xe   :  { %p594_p5 = scmp.ne.s32.totalorder %s36_s21, %s593_s25  ;;  %p599_p7 = scmp.lt.s32.totalorder %s593_s25, %s593_s25 }
  0x10   :  { %p600_p8 = por %p599_p7, %p598_p6 }
  0x12   :  { %p601_p9 = pnand %p600_p8, %p594_p5 }
  0x14   :  { %604 = shalt.err (!%p601_p9)
}
  0x15   :  { %38 = dma.hbm_to_vmem [thread:$0]  %s732_s4, 128, %s36_s21, [#allocation6]  }
  0x16   :  { %625 = dma.done.wait [#allocation3], 128  }
  0x17   :  { %626 = vsyncadd [#allocation3], 4294967168 }
  0x18   :  { %627 = dma.done.wait [#allocation6], 128  }
  0x19   :  { %628 = vsyncadd [#allocation6], 4294967168  ;;  %vm50_vm0 = vcmask 64512   ;;  %v49_v0 = vld [vmem:[%s729_s1] sm:$0xff]  ;;  %v46_v2 = vld [vmem:[%s728_s0 + $0x8] sm:$0xff]  ;;  %v633_v5 = vmov 0.0  }
  0x1a   :  { %v45_v1 = vld [vmem:[%s728_s0] sm:$0xff]  ;;  %528 = vmatprep.subr.mxu0 %v49_v0  ;;  %v47_v3 = vld [vmem:[%s728_s0 + $0x10] sm:$0xff]  ;;  %v48_v4 = vld [vmem:[%s728_s0 + $0x18] sm:$0xff]  ;;  %536 = vmatprep.subr.mxu1 %v633_v5  ;;  %vm634_vm1 = vmmov 0  }
  0x1b   :  { %530 = vmatprep.mubr.msk.f32.mxu0 %vm50_vm0, %v45_v1  ;;  %529 = vmatpush3.msra.mxu0 %v49_v0  ;;  %v148_v7 = vld [vmem:[%s730_s2] sm:$0xff]  ;;  %v149_v10 = vld [vmem:[%s730_s2 + $0x8] sm:$0xff]  ;;  %v150_v11 = vld [vmem:[%s730_s2 + $0x10] sm:$0xff] }
  0x1c   :  { %531 = vmatmul.mubr.msk.f32.vlgmr.msra.gmra.mxu0 %vm50_vm0, %v46_v2  ;;  %546 = vmatprep.subr.mxu0 %v633_v5  ;;  %v151_v13 = vld [vmem:[%s730_s2 + $0x18] sm:$0xff]  ;;  %v475_v48 = vld [vmem:[#allocation2] sm:$0xff]  ;;  %v480_v53 = vld [vmem:[#allocation5] sm:$0xff]  ;;  %s635_s2 = smov [#allocation7]  }
  0x1d   :  { %533 = vmatprep.mubr.msk.f32.mxu0 %vm50_vm0, %v47_v3  ;;  %538 = vmatprep.mubr.msk.f32.mxu1 %vm634_vm1, %v633_v5  ;;  %s494_s17 = sshll.u32 %s635_s2, 4  ;;  %s495_s17 = int_to_ptr.vmem [resolvable:$true] %s494_s17 }
  0x1e   :  { %s605_s18 = scalar_lea.vmem %s495_s17, 512  ;;  %p610_p11 = scmp.lt.s32.totalorder %s495_s17, %s495_s17 }
  0x1f   :  { %p606_p10 = scmp.ne.s32.totalorder %s495_s17, %s605_s18  ;;  %p611_p12 = scmp.lt.s32.totalorder %s605_s18, %s605_s18 }
  0x20   :  { %534 = vmatmul.mubr.msk.f32.gmra.mxu0 %vm50_vm0, %v48_v4 }
  0x21   :  { %548 = vmatprep.mubr.msk.f32.mxu0 %vm634_vm1, %v633_v5  ;;  %p612_p13 = por %p611_p12, %p610_p11 }
  0x23   :  { %p613_p0 = pnand %p612_p13, %p606_p10 }
  0xdc   :  { %v532_v6 = vpop.f32.mrf.mxu0 }
  0xde   :  { %v129_v8 = vpop.f32.mrf.mxu0 }
  0xdf   :  { %537 = vmatpush3.msra.mxu1 %v129_v8 }
  0xe0   :  { %v535_v9 = vpop.f32.mrf.mxu0  ;;  %539 = vmatmul.mubr.msk.f32.vlgmr.msra.gmra.mxu1 %vm50_vm0, %v148_v7  ;;  %541 = vmatprep.subr.mxu1 %v633_v5 }
  0xe1   :  { %542 = vmatpush3.msra.mxu1 %v532_v6  ;;  %543 = vmatprep.mubr.msk.f32.mxu1 %vm634_vm1, %v633_v5 }
  0xe2   :  { %v139_v12 = vpop.f32.mrf.mxu0  ;;  %551 = vmatprep.subr.mxu1 %v633_v5 }
  0xe3   :  { %547 = vmatpush3.msra.mxu0 %v139_v12 }
  0xe4   :  { %544 = vmatmul.mubr.msk.f32.vlgmr.msra.gmra.mxu1 %vm50_vm0, %v149_v10  ;;  %549 = vmatmul.mubr.msk.f32.vlgmr.msra.gmra.mxu0 %vm50_vm0, %v150_v11 }
  0xe5   :  { %552 = vmatpush3.msra.mxu1 %v535_v9  ;;  %553 = vmatprep.mubr.msk.f32.mxu1 %vm634_vm1, %v633_v5 }
  0xe8   :  { %554 = vmatmul.mubr.msk.f32.vlgmr.msra.gmra.mxu1 %vm50_vm0, %v151_v13 }
 0x1a0   :  { %v221_v14 = vpop.f32.mrf.mxu1 }
 0x1a1   :  { %v444_v18 = vsel %vm50_vm0, %v221_v14, 0.0 }
 0x1a2   :  { %v540_v15 = vpop.f32.mrf.mxu1 }
 0x1a4   :  { %v294_v16 = vpop.f32.mrf.mxu1  ;;  %v367_v17 = vpop.f32.mrf.mxu0 }
 0x1a5   :  { %v445_v19 = vsel %vm50_vm0, %v294_v16, 0.0  ;;  %v447_v20 = vsel %vm50_vm0, %v367_v17, 0.0 }
 0x1a6   :  { %v446_v21 = vadd.f32 %v445_v19, %v444_v18  ;;  %v545_v22 = vpop.f32.mrf.mxu1  ;;  %v550_v23 = vpop.f32.mrf.mxu0 }
 0x1a8   :  { %v448_v24 = vadd.f32 %v447_v20, %v446_v21  ;;  %v440_v25 = vpop.f32.mrf.mxu1 }
 0x1a9   :  { %v449_v26 = vsel %vm50_vm0, %v440_v25, 0.0 }
 0x1aa   :  { %v450_v27 = vadd.f32 %v449_v26, %v448_v24  ;;  %v555_v28 = vpop.f32.mrf.mxu1 }
 0x1ac   :  { %v452_v29 = vmul.f32 0.25, %v450_v27 }
 0x1ae   :  { %v453_v30 = vsub.f32 %v221_v14, %v452_v29  ;;  %v454_v31 = vsub.f32 %v294_v16, %v452_v29  ;;  %v455_v32 = vsub.f32 %v367_v17, %v452_v29  ;;  %v456_v33 = vsub.f32 %v440_v25, %v452_v29 }
 0x1b0   :  { %v457_v34 = vmul.f32 %v453_v30, %v453_v30  ;;  %v458_v35 = vmul.f32 %v454_v31, %v454_v31  ;;  %v459_v36 = vmul.f32 %v455_v32, %v455_v32  ;;  %v460_v37 = vmul.f32 %v456_v33, %v456_v33 }
 0x1b2   :  { %v461_v38 = vsel %vm50_vm0, %v457_v34, 0.0  ;;  %v462_v39 = vsel %vm50_vm0, %v458_v35, 0.0  ;;  %v464_v41 = vsel %vm50_vm0, %v459_v36, 0.0  ;;  %v466_v43 = vsel %vm50_vm0, %v460_v37, 0.0 }
 0x1b3   :  { %v463_v40 = vadd.f32 %v462_v39, %v461_v38 }
 0x1b5   :  { %v465_v42 = vadd.f32 %v464_v41, %v463_v40 }
 0x1b7   :  { %v467_v44 = vadd.f32 %v466_v43, %v465_v42 }
 0x1b9   :  { %v468_v45 = vmul.f32 0.25, %v467_v44 }
 0x1bb   :  { %v469_v46 = vadd.f32 1e-05, %v468_v45 }
 0x1bd   :  { %563 = vrsqrt.f32 %v469_v46 }
 0x1ca   :  { %v564_v47 = vpop.eup %563 }
 0x1cb   :  { %v471_v49 = vmul.f32 %v564_v47, %v453_v30  ;;  %v472_v50 = vmul.f32 %v564_v47, %v454_v31  ;;  %v473_v51 = vmul.f32 %v564_v47, %v455_v32  ;;  %v474_v52 = vmul.f32 %v564_v47, %v456_v33 }
 0x1cd   :  { %v476_v54 = vmul.f32 %v475_v48, %v471_v49  ;;  %v477_v55 = vmul.f32 %v475_v48, %v472_v50  ;;  %v478_v56 = vmul.f32 %v475_v48, %v473_v51  ;;  %v479_v57 = vmul.f32 %v475_v48, %v474_v52 }
 0x1cf   :  { %v481_v58 = vadd.f32 %v480_v53, %v476_v54  ;;  %v482_v59 = vadd.f32 %v480_v53, %v477_v55  ;;  %v483_v60 = vadd.f32 %v480_v53, %v478_v56  ;;  %v484_v61 = vadd.f32 %v480_v53, %v479_v57 }
 0x1d1   :  { %488 = vst.msk [vmem:[#allocation7 + $0x18] sm:$0xff] %vm50_vm0, %v484_v61  ;;  %485 = vst.msk [vmem:[#allocation7] sm:$0xff] %vm50_vm0, %v481_v58 }
 0x1d2   :  { %486 = vst.msk [vmem:[#allocation7 + $0x8] sm:$0xff] %vm50_vm0, %v482_v59  ;;  %487 = vst.msk [vmem:[#allocation7 + $0x10] sm:$0xff] %vm50_vm0, %v483_v60 }
 0x1d3   :  { %616 = shalt.err (!%p613_p0)
}
 0x1d4   :  { %s636_s19 = smov 128   ;;  %s637_s20 = smov 8  }
 0x1d5   :  { %500 = dma.vmem_to_hbm [thread:$0]  %s495_s17, 512, %s733_s5, [#allocation4], %s636_s19, %s636_s19, %s637_s20  }
 0x1d6   :  { %629 = dma.done.wait [#allocation4], 512  }
 0x1d7   :  { %630 = vsyncadd [#allocation4], 4294966784 }
 0x1d8   :  { %504 = vsyncpa [#allocation3], 1 }
 0x1d9   :  { %505 = vsyncpa [#allocation6], 1 }
 0x1da   :  { %506 = vsyncpa [#allocation4], 1 }

</bundles_post_ra>
